<compile_context>
chip_gen: v5e
topology: v5e:2x2
jax: 0.10.0
libtpu: 0.0.40
codegen_flags: <defaults>
</compile_context>

<pallas_src>
import functools

import jax
import jax.numpy as jnp
from jax import lax
from jax.experimental import pallas as pl
from jax.experimental.pallas import tpu as pltpu

_LANE = 128
# Double-buffered (in + out) VMEM budget per pallas_call, in bytes.  Kept well
# under the scoped-VMEM defaults (16 MiB v5e, 32 MiB v6e/v7x) and v7x's 64 MiB
# physical VMEM, so no vmem_limit_bytes override is needed.
_VMEM_TILE_BUDGET = 8 * 1024 * 1024


def _choose_tile_rows(rows, cols, itemsize):
    # in + out tiles, double-buffered -> ~4 live buffers of (tile, cols).
    t = _VMEM_TILE_BUDGET // (4 * cols * max(itemsize, 4))
    if t >= rows:
        return rows                      # single block == full array (always legal)
    return max(8, (t // 8) * 8)          # sublane-aligned tile


def _sumsq_kernel(z_ref, z0_ref, ss_ref, *, tile_rows, total_rows):
    """Accumulate sum((z - z0)**2) over the grid into an SMEM scalar output."""
    i = pl.program_id(0)

    @pl.when(i == 0)
    def _init():
        ss_ref[0] = jnp.float32(0.0)

    d = z_ref[...].astype(jnp.float32) - z0_ref[...].astype(jnp.float32)
    sq = d * d
    if total_rows % tile_rows != 0:
        # Last block is partial: out-of-bounds rows are undefined on read, so
        # mask them out of the global reduction.
        row = i * tile_rows + lax.broadcasted_iota(jnp.int32, sq.shape, 0)
        sq = jnp.where(row < total_rows, sq, 0.0)
    ss_ref[0] += jnp.sum(sq)


def _apply_kernel(bh_ref, z_ref, z0_ref, f_ref):
    """f = z + (beta*h) * (z - z0), with beta*h precomputed in SMEM."""
    bh = bh_ref[0]
    z = z_ref[...].astype(jnp.float32)
    z0 = z0_ref[...].astype(jnp.float32)
    f_ref[...] = (z + bh * (z - z0)).astype(f_ref.dtype)


def radial_flow_ref(z, z0, log_alpha, beta):
    """Pure-JAX reference mirroring the PyTorch forward (f32 internal math)."""
    z32 = z.astype(jnp.float32)
    z_sub = z32 - z0.astype(jnp.float32)
    alpha = jnp.exp(log_alpha.astype(jnp.float32)[0])
    b = beta.astype(jnp.float32)[0]
    r = jnp.sqrt(jnp.sum(z_sub * z_sub))
    h = 1.0 / (alpha + r)
    f = (z32 + b * h * z_sub).astype(z.dtype)
    D = z.shape[-1]
    log_det = ((D - 1) * jnp.log(jnp.abs(1.0 + b * h))
               + jnp.log(jnp.abs(1.0 + b * h + b - b * r / (alpha + r) ** 2)))
    return f, log_det


def radial_flow(z, z0, log_alpha, beta, *, tile_rows=None, min_pallas_elems=0):
    """z: (B, D); z0: (D,); log_alpha, beta: (1,).  Returns (f, log_det)."""
    B, D = z.shape

    # For tiny problems a fused XLA elementwise op beats kernel-call overhead;
    # set e.g. min_pallas_elems=65536 in production.  Default 0 so the Pallas
    # path is always exercised in this script.
    if B * D < min_pallas_elems:
        return radial_flow_ref(z, z0, log_alpha, beta)

    # ---- lane-dense layout plumbing (pure reshape; op is elementwise) ------
    if D % _LANE != 0 and _LANE % D == 0 and B % (_LANE // D) == 0:
        rep = _LANE // D
        zk = z.reshape(B // rep, rep * D)
        z0k = jnp.tile(z0, rep)
    else:
        zk = z
        z0k = z0
    R, C = zk.shape
    z0k = z0k.reshape(1, C).astype(jnp.float32)

    itemsize = jnp.dtype(z.dtype).itemsize
    tr = tile_rows if tile_rows is not None else _choose_tile_rows(R, C, itemsize)
    tr = min(tr, R)
    grid = (pl.cdiv(R, tr),)

    z_spec = pl.BlockSpec((tr, C), lambda i: (i, 0))
    z0_spec = pl.BlockSpec((1, C), lambda i: (0, 0))
    smem_spec = pl.BlockSpec(memory_space=pltpu.MemorySpace.SMEM)

    # ---- phase 1: global sum of squares (sequential accumulation) ----------
    ss = pl.pallas_call(
        functools.partial(_sumsq_kernel, tile_rows=tr, total_rows=R),
        out_shape=jax.ShapeDtypeStruct((1,), jnp.float32),
        grid=grid,
        in_specs=[z_spec, z0_spec],
        out_specs=smem_spec,
        compiler_params=pltpu.CompilerParams(
            dimension_semantics=("arbitrary",)),
        cost_estimate=pl.CostEstimate(
            flops=3 * R * C, transcendentals=0,
            bytes_accessed=R * C * itemsize + C * 4 + 4),
    )(zk, z0k)[0]

    # ---- scalar math in the wrapper (depends only on r, alpha, beta, D) ----
    alpha = jnp.exp(log_alpha.astype(jnp.float32)[0])
    b = beta.astype(jnp.float32)[0]
    r = jnp.sqrt(ss)
    h = 1.0 / (alpha + r)
    bh = b * h
    log_det = ((D - 1) * jnp.log(jnp.abs(1.0 + bh))
               + jnp.log(jnp.abs(1.0 + bh + b - b * r / (alpha + r) ** 2)))

    # ---- phase 2: tiled elementwise apply ("parallel" -> megacore shard) ---
    fk = pl.pallas_call(
        _apply_kernel,
        out_shape=jax.ShapeDtypeStruct((R, C), z.dtype),
        grid=grid,
        in_specs=[smem_spec, z_spec, z0_spec],
        out_specs=z_spec,
        compiler_params=pltpu.CompilerParams(
            dimension_semantics=("parallel",)),
        cost_estimate=pl.CostEstimate(
            flops=3 * R * C, transcendentals=0,
            bytes_accessed=2 * R * C * itemsize + C * 4),
    )(bh.reshape(1), zk, z0k)

    return fk.reshape(B, D), log_det


if __name__ == "__main__":
    key = jax.random.PRNGKey(0)
    k_z, k_z0, k_la, k_b, k_z2, k_z3 = jax.random.split(key, 6)

    rf = jax.jit(radial_flow, static_argnames=("tile_rows", "min_pallas_elems"))

    # Case 1: module-sized problem (B=8, D=32) -> lane-dense (2, 128) path.
    B, D = 8, 32
    z = jax.random.normal(k_z, (B, D), dtype=jnp.float32)
    z0 = jax.random.normal(k_z0, (D,), dtype=jnp.float32)
    log_alpha = jax.random.normal(k_la, (1,), dtype=jnp.float32)
    beta = jax.random.normal(k_b, (1,), dtype=jnp.float32)

    f, log_det = rf(z, z0, log_alpha, beta)
    f = jax.block_until_ready(f)
    log_det = jax.block_until_ready(log_det)
    f_ref, ld_ref = radial_flow_ref(z, z0, log_alpha, beta)
    assert jnp.allclose(f, f_ref, atol=1e-5, rtol=1e-5)
    assert jnp.allclose(log_det, ld_ref, atol=1e-5, rtol=1e-5)

    # Case 2: lane-aligned D, forced small tile -> multi-step grid
    # (sequential SMEM accumulation + parallel apply).
    B2, D2 = 64, 128
    z2 = jax.random.normal(k_z2, (B2, D2), dtype=jnp.float32)
    z0_2 = jax.random.normal(k_z0, (D2,), dtype=jnp.float32)
    f2, ld2 = rf(z2, z0_2, log_alpha, beta, tile_rows=16)
    jax.block_until_ready(f2)
    f2_ref, ld2_ref = radial_flow_ref(z2, z0_2, log_alpha, beta)
    assert jnp.allclose(f2, f2_ref, atol=1e-4, rtol=1e-5)
    assert jnp.allclose(ld2, ld2_ref, atol=1e-4, rtol=1e-5)

    # Case 3: rows not divisible by the tile (partial last block, masked
    # reduction) + bf16 I/O with f32 internal math.
    B3, D3 = 40, 128
    z3 = jax.random.normal(k_z3, (B3, D3), dtype=jnp.float32).astype(jnp.bfloat16)
    z0_3 = jax.random.normal(k_z0, (D3,), dtype=jnp.float32)
    f3, ld3 = rf(z3, z0_3, log_alpha, beta, tile_rows=16)
    jax.block_until_ready(f3)
    f3_ref, ld3_ref = radial_flow_ref(z3, z0_3, log_alpha, beta)
    assert jnp.allclose(f3.astype(jnp.float32), f3_ref.astype(jnp.float32),
                        atol=2e-2, rtol=2e-2)
    assert jnp.allclose(ld3, ld3_ref, atol=1e-3, rtol=1e-3)

    print("KERNEL_OK")
</pallas_src>

<mosaic_0001>
module attributes {stable_mosaic.version = 11 : i64} {
  func.func @_sumsq_kernel(%arg0: i32, %arg1: memref<2x128xf32, #tpu.memory_space<vmem>>, %arg2: memref<1x128xf32, #tpu.memory_space<vmem>>, %arg3: memref<1xf32, #tpu.memory_space<smem>>) attributes {dimension_semantics = [#tpu.dimension_semantics<arbitrary>], iteration_bounds = array<i64: 1>, scalar_prefetch = 0 : i64, scratch_operands = 0 : i64, tpu.core_type = #tpu.core_type<tc>, window_params = [{transform_indices = @transform_0, window_bounds = array<i64: 2, 128>}, {pipeline_mode = #tpu.pipeline_mode<synchronous>, transform_indices = @transform_1, window_bounds = array<i64: 1, 128>}, {transform_indices = @transform_2, window_bounds = array<i64: 1>}]} {
    %c0_i32 = arith.constant 0 : i32
    %0 = arith.cmpi eq, %arg0, %c0_i32 : i32
    %1 = arith.extui %0 : i1 to i32
    %c0_i32_0 = arith.constant 0 : i32
    %2 = arith.cmpi ne, %1, %c0_i32_0 : i32
    scf.if %2 {
      %cst_6 = arith.constant 0.000000e+00 : f32
      %c0_7 = arith.constant 0 : index
      %15 = memref.load %arg3[%c0_7] : memref<1xf32, #tpu.memory_space<smem>>
      memref.store %cst_6, %arg3[%c0_7] : memref<1xf32, #tpu.memory_space<smem>>
    } else {
    }
    %c0 = arith.constant 0 : index
    %c0_1 = arith.constant 0 : index
    %3 = vector.load %arg1[%c0, %c0_1] : memref<2x128xf32, #tpu.memory_space<vmem>>, vector<2x128xf32>
    %c0_2 = arith.constant 0 : index
    %c0_3 = arith.constant 0 : index
    %4 = vector.load %arg2[%c0_2, %c0_3] : memref<1x128xf32, #tpu.memory_space<vmem>>, vector<1x128xf32>
    %5 = vector.broadcast %4 : vector<1x128xf32> to vector<2x128xf32>
    %6 = arith.subf %3, %5 : vector<2x128xf32>
    %7 = arith.mulf %6, %6 : vector<2x128xf32>
    %c0_4 = arith.constant 0 : index
    %8 = memref.load %arg3[%c0_4] : memref<1xf32, #tpu.memory_space<smem>>
    %9 = vector.shape_cast %7 : vector<2x128xf32> to vector<1x2x128xf32>
    %cst = arith.constant dense<0.000000e+00> : vector<1xf32>
    %10 = vector.multi_reduction <add>, %9, %cst [1, 2] : vector<1x2x128xf32> to vector<1xf32>
    %11 = vector.shape_cast %10 : vector<1xf32> to vector<1x1x1xf32>
    %12 = vector.extract %11[0, 0, 0] : f32 from vector<1x1x1xf32>
    %13 = arith.addf %8, %12 : f32
    %c0_5 = arith.constant 0 : index
    %14 = memref.load %arg3[%c0_5] : memref<1xf32, #tpu.memory_space<smem>>
    memref.store %13, %arg3[%c0_5] : memref<1xf32, #tpu.memory_space<smem>>
    return
  }
  func.func @transform_0(%arg0: i32) -> (i32, i32) {
    %c0_i32 = arith.constant 0 : i32
    %c0_i32_0 = arith.constant 0 : i32
    return %arg0, %c0_i32 : i32, i32
  }
  func.func @transform_1(%arg0: i32) -> (i32, i32) {
    %c0_i32 = arith.constant 0 : i32
    %c0_i32_0 = arith.constant 0 : i32
    %c0_i32_1 = arith.constant 0 : i32
    return %c0_i32, %c0_i32_0 : i32, i32
  }
  func.func @transform_2(%arg0: i32) -> i32 {
    %c0_i32 = arith.constant 0 : i32
    %c0_i32_0 = arith.constant 0 : i32
    return %c0_i32 : i32
  }
}

module attributes {stable_mosaic.version = 11 : i64} {
  func.func @_apply_kernel(%arg0: i32, %arg1: memref<1xf32, #tpu.memory_space<smem>>, %arg2: memref<2x128xf32, #tpu.memory_space<vmem>>, %arg3: memref<1x128xf32, #tpu.memory_space<vmem>>, %arg4: memref<2x128xf32, #tpu.memory_space<vmem>>) attributes {dimension_semantics = [#tpu.dimension_semantics<parallel>], iteration_bounds = array<i64: 1>, scalar_prefetch = 0 : i64, scratch_operands = 0 : i64, tpu.core_type = #tpu.core_type<tc>, window_params = [{transform_indices = @transform_0, window_bounds = array<i64: 1>}, {transform_indices = @transform_1, window_bounds = array<i64: 2, 128>}, {pipeline_mode = #tpu.pipeline_mode<synchronous>, transform_indices = @transform_2, window_bounds = array<i64: 1, 128>}, {transform_indices = @transform_3, window_bounds = array<i64: 2, 128>}]} {
    %c0 = arith.constant 0 : index
    %0 = memref.load %arg1[%c0] : memref<1xf32, #tpu.memory_space<smem>>
    %c0_0 = arith.constant 0 : index
    %c0_1 = arith.constant 0 : index
    %1 = vector.load %arg2[%c0_0, %c0_1] : memref<2x128xf32, #tpu.memory_space<vmem>>, vector<2x128xf32>
    %c0_2 = arith.constant 0 : index
    %c0_3 = arith.constant 0 : index
    %2 = vector.load %arg3[%c0_2, %c0_3] : memref<1x128xf32, #tpu.memory_space<vmem>>, vector<1x128xf32>
    %3 = vector.broadcast %2 : vector<1x128xf32> to vector<2x128xf32>
    %4 = arith.subf %1, %3 : vector<2x128xf32>
    %5 = vector.broadcast %0 : f32 to vector<2x128xf32>
    %6 = arith.mulf %5, %4 : vector<2x128xf32>
    %7 = arith.addf %1, %6 : vector<2x128xf32>
    %c0_4 = arith.constant 0 : index
    %c0_5 = arith.constant 0 : index
    %8 = vector.load %arg4[%c0_4, %c0_5] : memref<2x128xf32, #tpu.memory_space<vmem>>, vector<2x128xf32>
    tpu.vector_store %arg4[%c0_4, %c0_5], %7 {strides = array<i32>} : memref<2x128xf32, #tpu.memory_space<vmem>>, vector<2x128xf32>,
    return
  }
  func.func @transform_0(%arg0: i32) -> i32 {
    %c0_i32 = arith.constant 0 : i32
    %c0_i32_0 = arith.constant 0 : i32
    return %c0_i32 : i32
  }
  func.func @transform_1(%arg0: i32) -> (i32, i32) {
    %c0_i32 = arith.constant 0 : i32
    %c0_i32_0 = arith.constant 0 : i32
    return %arg0, %c0_i32 : i32, i32
  }
  func.func @transform_2(%arg0: i32) -> (i32, i32) {
    %c0_i32 = arith.constant 0 : i32
    %c0_i32_0 = arith.constant 0 : i32
    %c0_i32_1 = arith.constant 0 : i32
    return %c0_i32, %c0_i32_0 : i32, i32
  }
  func.func @transform_3(%arg0: i32) -> (i32, i32) {
    %c0_i32 = arith.constant 0 : i32
    %c0_i32_0 = arith.constant 0 : i32
    return %arg0, %c0_i32 : i32, i32
  }
}

</mosaic_0001>

<bundles_post_ra>
// kernel: tile.9
= control target key start
LH: loop header
LB: loop body
LE: loop exit
PB: predicated region body
PF: predicated region fallthrough
CT: control target
= control target key end

     0   :  { %s37_s8 = smov 32   ;;  %s38_s9 = smov 64   ;;  %vm7_vm0 = vcmask 261120   ;;  %vm13_vm1 = vcmask 1048320   ;;  %vm19_vm2 = vcmask 785920   ;;  %vm25_vm3 = vcmask 523520   ;;  %s55_s0 = inlined_call_operand.vmem [shape: f32[4,32], index: 0, kind: input, shape index: {}]   ;;  %s56_s1 = inlined_call_operand.vmem [shape: f32[1,128], index: 1, kind: output, shape index: {}]  }
   0x1   :  { %v4_v0 = vld [vmem:[%s55_s0] sm:$0xf]  ;;  %s36_s0 = smov 96  }
   0x2   :  { %5 = vst [vmem:[#allocation1] sm:$0xf] %v4_v0 }
   0x9   :  { %v10_v1 = vld [vmem:[#allocation1 + $0x3] sm:$0x1]   ;;  %v22_v2 = vld [vmem:[#allocation1 + $0x1] sm:$0x1]   ;;  %v16_v3 = vld [vmem:[#allocation1 + $0x2] sm:$0x1]  }
   0xa   :  { %11 = vrot.lane.b32.xlu0 %v10_v1, %s36_s0  ;;  %23 = vrot.lane.b32.xlu1 %v22_v2, %s37_s8  ;;  %v6_v4 = vld [vmem:[#allocation1] sm:$0x1]  }
   0xb   :  { %8 = vst.msk [vmem:[#allocation0] sm:$0x1] %vm7_vm0, %v6_v4  }
  0x12   :  { %17 = vrot.lane.b32.xlu0 %v16_v3, %s38_s9 }
  0x7c   :  { %v12_v5 = vpop.permute.xlu0 %11   ;;  %v24_v6 = vpop.permute.xlu1 %23  }
  0x7d   :  { %14 = vst.msk [vmem:[#allocation0] sm:$0x1] %vm13_vm1, %v12_v5  }
  0x84   :  { %v18_v7 = vpop.permute.xlu0 %17  }
  0x85   :  { %20 = vst.msk [vmem:[#allocation0] sm:$0x1] %vm19_vm2, %v18_v7  }
  0x86   :  { %26 = vst.msk [vmem:[#allocation0] sm:$0x1] %vm25_vm3, %v24_v6  }
  0x8d   :  { %v29_v8 = vld [vmem:[#allocation0] sm:$0x1] }
  0x8e   :  { %32 = vst [vmem:[%s56_s1] sm:$0x1] %v29_v8 }

// kernel: tile.8
= control target key start
LH: loop header
LB: loop body
LE: loop exit
PB: predicated region body
PF: predicated region fallthrough
CT: control target
= control target key end

     0   :  { %s22_s0 = inlined_call_operand.vmem [shape: f32[32], index: 0, kind: input, shape index: {}]   ;;  %s23_s1 = inlined_call_operand.vmem [shape: f32[4,32], index: 1, kind: output, shape index: {}]  }
   0x1   :  { %v4_v0 = vld [vmem:[%s22_s0] ss:$0 sm:$0xff] }
   0x2   :  { %5 = vst [vmem:[%s23_s1] sm:$0xf] %v4_v0 }

// kernel: radial_flow.3
= control target key start
LH: loop header
LB: loop body
LE: loop exit
PB: predicated region body
PF: predicated region fallthrough
CT: control target
= control target key end

     0   :  { %s63_s0 = inlined_call_operand.<no memory space> [shape: f32[1], index: 0, kind: input, shape index: {}]   ;;  %s64_s1 = inlined_call_operand.vmem [shape: f32[2,128], index: 1, kind: input, shape index: {}]   ;;  %s65_s2 = inlined_call_operand.vmem [shape: f32[1,128], index: 2, kind: input, shape index: {}]   ;;  %s66_s3 = inlined_call_operand.vmem [shape: f32[2,128], index: 3, kind: output, shape index: {}]  }
   0x1   :  { %v16_v0 = vld [vmem:[%s64_s1] sm:$0x3]  ;;  %v22_v2 = vstv %s63_s0 }
   0x2   :  { %v30_v1 = vld [vmem:[%s65_s2] ss:$0 sm:$0xff] }
   0x3   :  { %v21_v3 = vsub.f32 %v16_v0, %v30_v1 }
   0x5   :  { %v23_v4 = vmul.f32 %v22_v2, %v21_v3 }
   0x7   :  { %v24_v5 = vadd.f32 %v23_v4, %v16_v0 }
   0x9   :  { %25 = vst [vmem:[%s66_s3] sm:$0x3] %v24_v5 }

// kernel: radial_flow.2
= control target key start
LH: loop header
LB: loop body
LE: loop exit
PB: predicated region body
PF: predicated region fallthrough
CT: control target
= control target key end

     0   :  { %s99_s0 = inlined_call_operand.vmem [shape: f32[2,128], index: 0, kind: input, shape index: {}]   ;;  %s100_s1 = inlined_call_operand.vmem [shape: f32[1,128], index: 1, kind: input, shape index: {}]   ;;  %s101_s2 = inlined_call_operand.hbm [shape: f32[1], index: 2, kind: output, shape index: {}]  }
   0x1   :  { %v18_v0 = vld [vmem:[%s99_s0] sm:$0x3] }
   0x2   :  { %v59_v1 = vld [vmem:[%s100_s1] ss:$0 sm:$0xff] }
   0x3   :  { %7 = vsyncpa [#allocation3], 0  ;;  %v23_v2 = vsub.f32 %v18_v0, %v59_v1  ;;  %vm26_vm0 = vcmask 1041408   ;;  %s45_s14 = sshll.u32 %s101_s2, 4  ;;  %s74_s1 = smov [#allocation2]   ;;  %s46_s14 = int_to_ptr.hbm [resolvable:$true] %s45_s14 }
   0x5   :  { %v24_v3 = vmul.f32 %v23_v2, %v23_v2 }
   0x7   :  { %v27_v4 = vsel %vm26_vm0, %v24_v3, 0.0 }
   0x8   :  { %28 = vadd.xlane.f32.xlu0 %v27_v4 }
  0x7b   :  { %v29_v5 = vpop.xlane.xlu0 %28 }
  0x7c   :  { %v30_v6 = vrot.slane %v29_v5, 4 }
  0x7e   :  { %v31_v7 = vadd.f32 %v30_v6, %v29_v5 }
  0x80   :  { %v32_v8 = vrot.slane %v31_v7, 2 }
  0x82   :  { %v33_v9 = vadd.f32 %v32_v8, %v31_v7 }
  0x84   :  { %v34_v10 = vrot.slane %v33_v9, 1 }
  0x86   :  { %v35_v11 = vadd.f32 %v34_v10, %v33_v9 }
  0x88   :  { %55 = vpush %v35_v11 }
  0xb9   :  { %s56_s15 = spop %55 }
  0xba   :  { %39 = sst [smem:[#allocation2]] %s56_s15 }
  0xbb   :  { %48 = dma.smem_to_hbm %s74_s1, 16, %s46_s14, [#allocation3]  }
  0xbc   :  { %72 = dma.done.wait [#allocation3], 16  }
  0xbd   :  { %73 = vsyncadd [#allocation3], 4294967280 }
  0xbe   :  { %53 = sfence }
  0xbf   :  { %54 = vsyncpa [#allocation3], 1 }

</bundles_post_ra>
